<compile_context>
chip_gen: v6e
topology: v6e:2x2x1
jax: 0.10.0
libtpu: 0.0.40
codegen_flags: <defaults>
</compile_context>

<pallas_src>
import functools

import numpy as np
import jax
import jax.numpy as jnp
from jax.experimental import pallas as pl
from jax.experimental.pallas import tpu as pltpu


# ----------------------------- helpers (same as GPTFast) ---------------------
def find_multiple(n: int, k: int) -> int:
    if n % k == 0:
        return n
    return n + k - (n % k)


def check_linear_int4_k(k: int, groupsize: int = 1, inner_k_tiles: int = 1) -> bool:
    return k % groupsize == 0 and k % (inner_k_tiles * 16) == 0


def _round_up(x: int, m: int) -> int:
    return (x + m - 1) // m * m


# ----------------------------- Pallas kernel ---------------------------------
def _int4_linear_kernel(x_ref, wq_ref, s_ref, z_ref, o_ref, acc_ref, *, groupsize):
    # x_ref  : (tm, tk)     bf16 activations
    # wq_ref : (tk//8, tn)  int32, group-chunked int4 packing along K
    # s_ref  : (G, tn)      f32 scales (full K extent, resident per N tile)
    # z_ref  : (G, tn)      f32 zeros
    # o_ref  : (tm, tn)     output (input dtype)
    # acc_ref: (tm, tn)     f32 accumulator scratch
    k_idx = pl.program_id(2)

    @pl.when(k_idx == 0)
    def _init():
        acc_ref[...] = jnp.zeros_like(acc_ref)

    tk = x_ref.shape[1]
    tn = o_ref.shape[1]
    gs8 = groupsize // 8
    g_per_tile = tk // groupsize
    g_base = k_idx * g_per_tile

    w_parts = []
    for g in range(g_per_tile):
        s_g = s_ref[pl.ds(g_base + g, 1), :]            # (1, tn) f32
        z_g = z_ref[pl.ds(g_base + g, 1), :]            # (1, tn) f32
        # Hoist the sublane broadcasts out of the 8-chunk loop (JAX won't CSE them);
        # fold the (q - 8) offset into the bias so dequant is a single FMA-shape op.
        s_b = jnp.broadcast_to(s_g, (gs8, tn))
        zb_b = jnp.broadcast_to(z_g - 8.0 * s_g, (gs8, tn))
        wq_g = wq_ref[g * gs8:(g + 1) * gs8, :]         # (gs8, tn) int32, static slice
        for j in range(8):                              # 8 static shifts, no iota/relayout
            q_c = ((wq_g >> (4 * j)) & 0xF).astype(jnp.float32)
            w_parts.append((q_c * s_b + zb_b).astype(jnp.bfloat16))
    # Chunks come out in natural K order -> one aligned sublane concat.
    w = jnp.concatenate(w_parts, axis=0)                # (tk, tn) bf16

    # bf16 x bf16 MXU matmul with f32 accumulation.
    acc_ref[...] += jnp.dot(x_ref[...], w, preferred_element_type=jnp.float32)

    @pl.when(k_idx == pl.num_programs(2) - 1)
    def _store():
        o_ref[...] = acc_ref[...].astype(o_ref.dtype)


def _choose_tiles(M, K, N, groupsize, max_tk=2048):
    # N tile: 256 fills the 256-wide MXU on v6e/v7x; 128 is native for v5e and
    # small layers.  (Keep a lane-dense multiple of 128 whenever possible.)
    if N % 256 == 0:
        tn = 256
    elif N % 128 == 0:
        tn = 128
    else:
        tn = N
    # K tile: largest multiple of lcm(groupsize, 128) dividing K, up to max_tk.
    if K <= max_tk:
        tk = K
    else:
        step = int(np.lcm(groupsize, 128))
        tk = K
        if K % step == 0:
            t = step
            best = step
            while t <= max_tk:
                if K % t == 0:
                    best = t
                t += step
            tk = best
    # M tile: up to 256 rows (second parallel axis for megacore / 2-TC sharding).
    tm = min(256, _round_up(M, 8))
    return tm, tn, tk


def int4_linear_pallas(x2d, wq_packed, scales, zeros, out_features, groupsize):
    M, K = x2d.shape
    N = out_features
    G = K // groupsize
    tm, tn, tk = _choose_tiles(M, K, N, groupsize)

    # Feed the MXU bf16 operands; accumulate in f32 inside the kernel.
    x_bf16 = x2d.astype(jnp.bfloat16)
    M_pad = _round_up(M, tm)
    if M_pad != M:
        x_bf16 = jnp.pad(x_bf16, ((0, M_pad - M), (0, 0)))

    grid = (M_pad // tm, N // tn, K // tk)
    kernel = functools.partial(_int4_linear_kernel, groupsize=groupsize)

    out = pl.pallas_call(
        kernel,
        out_shape=jax.ShapeDtypeStruct((M_pad, N), x2d.dtype),
        grid_spec=pltpu.PrefetchScalarGridSpec(
            num_scalar_prefetch=0,
            grid=grid,
            in_specs=[
                pl.BlockSpec((tm, tk), lambda i, j, k: (i, k)),
                pl.BlockSpec((tk // 8, tn), lambda i, j, k: (k, j)),
                # Scales/zeros are tiny; keep the full K extent resident per N
                # tile and index the needed group rows dynamically in-kernel.
                pl.BlockSpec((G, tn), lambda i, j, k: (0, j)),
                pl.BlockSpec((G, tn), lambda i, j, k: (0, j)),
            ],
            out_specs=pl.BlockSpec((tm, tn), lambda i, j, k: (i, j)),
            scratch_shapes=[pltpu.VMEM((tm, tn), jnp.float32)],
        ),
        compiler_params=pltpu.CompilerParams(
            dimension_semantics=("parallel", "parallel", "arbitrary")),
    )(x_bf16, wq_packed, scales, zeros)

    if M_pad != M:
        out = out[:M]
    return out


# ----------------------------- module port -----------------------------------
class WeightOnlyInt4Linear:
    def __init__(self, in_features: int, out_features: int, bias=False,
                 groupsize: int = 128, inner_k_tiles: int = 8, key=None):
        self.padding = not check_linear_int4_k(in_features, groupsize, inner_k_tiles)
        if self.padding:
            self.origin_in_features = in_features
            in_features = find_multiple(in_features, 1024)
        self.in_features = in_features
        self.out_features = out_features
        assert not bias, "require bias=False"
        self.groupsize = groupsize
        self.inner_k_tiles = inner_k_tiles
        assert out_features % 8 == 0, "require out_features % 8 == 0"
        assert in_features % (inner_k_tiles * 16) == 0, \
            "require in_features % (innerKTiles * 16) == 0"
        assert groupsize % 8 == 0, "require groupsize % 8 == 0"

        key = jax.random.PRNGKey(0) if key is None else key
        kq, ks, kz = jax.random.split(key, 3)

        # Deterministic synthetic int4 codes q[n, k] in [0, 15].
        q_nk = np.asarray(
            jax.random.randint(kq, (out_features, in_features), 0, 16, dtype=jnp.int32),
            dtype=np.uint32)

        # Registered buffer with the module's exact shape:
        # (N//8, K//(inner_k_tiles*16), 32, inner_k_tiles//2) int32.
        # TODO(synk): the bit-interleave below is a documented row-major
        # convention, not the CUDA tinygemm permutation (an op-internal detail).
        self.weight = jnp.asarray(
            self._pack_buffer(q_nk, out_features, in_features, inner_k_tiles))

        scales = jax.random.uniform(ks, (in_features // groupsize, out_features),
                                    minval=0.5, maxval=1.5, dtype=jnp.float32)
        zeros = jax.random.uniform(kz, (in_features // groupsize, out_features),
                                   minval=-0.5, maxval=0.5, dtype=jnp.float32)
        self.scales_and_zeros = jnp.stack([scales, zeros], axis=-1).astype(jnp.bfloat16)

        # ---- one-time glue: repack params into the kernel layout ----
        self._wq_packed = self._repack_for_kernel(
            np.asarray(self.weight), out_features, in_features, groupsize)
        sz_f32 = self.scales_and_zeros.astype(jnp.float32)
        self._scales = sz_f32[..., 0]     # (K // groupsize, N) f32
        self._zeros = sz_f32[..., 1]      # (K // groupsize, N) f32

    # pack q (N, K) int4 codes into the 4D int32 buffer (row-major, 8/int32)
    @staticmethod
    def _pack_buffer(q_nk, N, K, inner_k_tiles):
        flat = q_nk.reshape(-1).astype(np.uint32).reshape(-1, 8)   # (N*K/8, 8)
        packed = np.zeros(flat.shape[0], dtype=np.uint32)
        for j in range(8):
            packed |= flat[:, j] << np.uint32(4 * j)
        return packed.view(np.int32).reshape(
            N // 8, K // (inner_k_tiles * 16), 32, inner_k_tiles // 2)

    # unpack the 4D buffer back to q (N, K), then repack along K with the
    # group-chunked nibble layout the kernel expects:
    # nibble j of packed[g*(gs/8) + kb, n] = q[n, g*gs + j*(gs/8) + kb]
    @staticmethod
    def _repack_for_kernel(weight_buf, N, K, groupsize):
        flat = np.ascontiguousarray(weight_buf).view(np.uint32).reshape(-1)
        nibs = np.stack([(flat >> np.uint32(4 * j)) & np.uint32(0xF) for j in range(8)],
                        axis=1)                                    # (N*K/8, 8)
        q_nk = nibs.reshape(N, K)
        gs8 = groupsize // 8
        G = K // groupsize
        q_gkn = q_nk.T.astype(np.uint32).reshape(G, 8, gs8, N)     # k = g*gs + j*gs8 + kb
        packed = np.zeros((G, gs8, N), dtype=np.uint32)
        for j in range(8):
            packed |= q_gkn[:, j, :, :] << np.uint32(4 * j)
        return jnp.asarray(packed.reshape(K // 8, N).view(np.int32))

    def __call__(self, x):
        lead_shape = x.shape[:-1]
        if self.padding:
            pad = self.in_features - self.origin_in_features
            x = jnp.pad(x, [(0, 0)] * (x.ndim - 1) + [(0, pad)])
        x2d = x.reshape(-1, self.in_features)
        out = int4_linear_pallas(x2d, self._wq_packed, self._scales, self._zeros,
                                 self.out_features, self.groupsize)
        return out.reshape(lead_shape + (self.out_features,))

    # pure-numpy reference (dequantize full weight, f32 matmul)
    def reference(self, x):
        flat = np.ascontiguousarray(np.asarray(self.weight)).view(np.uint32).reshape(-1)
        nibs = np.stack([(flat >> np.uint32(4 * j)) & np.uint32(0xF) for j in range(8)],
                        axis=1)
        q_nk = nibs.reshape(self.out_features, self.in_features).astype(np.float32)
        sz = np.asarray(self.scales_and_zeros.astype(jnp.float32))
        s_full = np.repeat(sz[..., 0], self.groupsize, axis=0)     # (K, N)
        z_full = np.repeat(sz[..., 1], self.groupsize, axis=0)     # (K, N)
        w_kn = (q_nk.T - 8.0) * s_full + z_full                    # (K, N)
        xn = np.asarray(x, dtype=np.float32)
        lead_shape = xn.shape[:-1]
        if self.padding:
            pad = self.in_features - self.origin_in_features
            xn = np.pad(xn, [(0, 0)] * (xn.ndim - 1) + [(0, pad)])
        out = xn.reshape(-1, self.in_features) @ w_kn
        return out.reshape(lead_shape + (self.out_features,))


# ----------------------------- demo ------------------------------------------
if __name__ == "__main__":
    key = jax.random.PRNGKey(0)
    kx, kw = jax.random.split(key)

    in_features, out_features = 256, 128    # 256 % 128 == 0 -> no padding path
    batch, seq = 2, 8

    layer = WeightOnlyInt4Linear(in_features, out_features,
                                 groupsize=128, inner_k_tiles=8, key=kw)

    x = jax.random.normal(kx, (batch, seq, in_features), dtype=jnp.float32)
    x = x.astype(jnp.bfloat16)

    out = layer(x)
    out = jax.block_until_ready(out)

    assert out.shape == (batch, seq, out_features)
    assert out.dtype == jnp.bfloat16

    ref = layer.reference(x)
    np.testing.assert_allclose(np.asarray(out, dtype=np.float32), ref,
                               rtol=2e-2, atol=2.0)

    print("KERNEL_OK")
</pallas_src>

<mosaic_0001>
module attributes {stable_mosaic.version = 11 : i64} {
  func.func @_int4_linear_kernel(%arg0: i32, %arg1: i32, %arg2: i32, %arg3: memref<16x256xbf16, #tpu.memory_space<vmem>>, %arg4: memref<32x128xi32, #tpu.memory_space<vmem>>, %arg5: memref<2x128xf32, #tpu.memory_space<vmem>>, %arg6: memref<2x128xf32, #tpu.memory_space<vmem>>, %arg7: memref<16x128xbf16, #tpu.memory_space<vmem>>, %arg8: memref<16x128xf32, #tpu.memory_space<vmem>>) attributes {dimension_semantics = [#tpu.dimension_semantics<parallel>, #tpu.dimension_semantics<parallel>, #tpu.dimension_semantics<arbitrary>], iteration_bounds = array<i64: 1, 1, 1>, scalar_prefetch = 0 : i64, scratch_operands = 1 : i64, tpu.core_type = #tpu.core_type<tc>, window_params = [{transform_indices = @transform_0, window_bounds = array<i64: 16, 256>}, {transform_indices = @transform_1, window_bounds = array<i64: 32, 128>}, {transform_indices = @transform_2, window_bounds = array<i64: 2, 128>}, {transform_indices = @transform_3, window_bounds = array<i64: 2, 128>}, {transform_indices = @transform_4, window_bounds = array<i64: 16, 128>}]} {
    %c0_i32 = arith.constant 0 : i32
    %0 = arith.cmpi eq, %arg2, %c0_i32 : i32
    %1 = arith.extui %0 : i1 to i32
    %c0_i32_0 = arith.constant 0 : i32
    %2 = arith.cmpi ne, %1, %c0_i32_0 : i32
    scf.if %2 {
      %cst_44 = arith.constant 0.000000e+00 : f32
      %169 = vector.broadcast %cst_44 : f32 to vector<16x128xf32>
      %c0_45 = arith.constant 0 : index
      %c0_46 = arith.constant 0 : index
      %170 = vector.load %arg8[%c0_45, %c0_46] : memref<16x128xf32, #tpu.memory_space<vmem>>, vector<16x128xf32>
      tpu.vector_store %arg8[%c0_45, %c0_46], %169 {strides = array<i32>} : memref<16x128xf32, #tpu.memory_space<vmem>>, vector<16x128xf32>,
    } else {
    }
    %c2_i32 = arith.constant 2 : i32
    %3 = arith.muli %arg2, %c2_i32 : i32
    %c0_i32_1 = arith.constant 0 : i32
    %4 = arith.addi %3, %c0_i32_1 : i32
    %5 = arith.index_cast %4 : i32 to index
    %c0 = arith.constant 0 : index
    %6 = vector.load %arg5[%5, %c0] : memref<2x128xf32, #tpu.memory_space<vmem>>, vector<1x128xf32>
    %c0_i32_2 = arith.constant 0 : i32
    %7 = arith.addi %3, %c0_i32_2 : i32
    %8 = arith.index_cast %7 : i32 to index
    %c0_3 = arith.constant 0 : index
    %9 = vector.load %arg6[%8, %c0_3] : memref<2x128xf32, #tpu.memory_space<vmem>>, vector<1x128xf32>
    %10 = vector.shape_cast %6 : vector<1x128xf32> to vector<1x128xf32>
    %11 = vector.broadcast %10 : vector<1x128xf32> to vector<16x128xf32>
    %cst = arith.constant 8.000000e+00 : f32
    %12 = vector.broadcast %cst : f32 to vector<1x128xf32>
    %13 = arith.mulf %12, %6 : vector<1x128xf32>
    %14 = arith.subf %9, %13 : vector<1x128xf32>
    %15 = vector.shape_cast %14 : vector<1x128xf32> to vector<1x128xf32>
    %16 = vector.broadcast %15 : vector<1x128xf32> to vector<16x128xf32>
    %c0_4 = arith.constant 0 : index
    %c0_5 = arith.constant 0 : index
    %17 = vector.load %arg4[%c0_4, %c0_5] : memref<32x128xi32, #tpu.memory_space<vmem>>, vector<16x128xi32>
    %c0_i32_6 = arith.constant 0 : i32
    %18 = vector.broadcast %c0_i32_6 : i32 to vector<16x128xi32>
    %19 = arith.shrsi %17, %18 : vector<16x128xi32>
    %c15_i32 = arith.constant 15 : i32
    %20 = vector.broadcast %c15_i32 : i32 to vector<16x128xi32>
    %21 = arith.andi %19, %20 : vector<16x128xi32>
    %22 = arith.sitofp %21 : vector<16x128xi32> to vector<16x128xf32>
    %23 = arith.mulf %22, %11 : vector<16x128xf32>
    %24 = arith.addf %23, %16 : vector<16x128xf32>
    %25 = arith.truncf %24 : vector<16x128xf32> to vector<16x128xbf16>
    %c4_i32 = arith.constant 4 : i32
    %26 = vector.broadcast %c4_i32 : i32 to vector<16x128xi32>
    %27 = arith.shrsi %17, %26 : vector<16x128xi32>
    %c15_i32_7 = arith.constant 15 : i32
    %28 = vector.broadcast %c15_i32_7 : i32 to vector<16x128xi32>
    %29 = arith.andi %27, %28 : vector<16x128xi32>
    %30 = arith.sitofp %29 : vector<16x128xi32> to vector<16x128xf32>
    %31 = arith.mulf %30, %11 : vector<16x128xf32>
    %32 = arith.addf %31, %16 : vector<16x128xf32>
    %33 = arith.truncf %32 : vector<16x128xf32> to vector<16x128xbf16>
    %c8_i32 = arith.constant 8 : i32
    %34 = vector.broadcast %c8_i32 : i32 to vector<16x128xi32>
    %35 = arith.shrsi %17, %34 : vector<16x128xi32>
    %c15_i32_8 = arith.constant 15 : i32
    %36 = vector.broadcast %c15_i32_8 : i32 to vector<16x128xi32>
    %37 = arith.andi %35, %36 : vector<16x128xi32>
    %38 = arith.sitofp %37 : vector<16x128xi32> to vector<16x128xf32>
    %39 = arith.mulf %38, %11 : vector<16x128xf32>
    %40 = arith.addf %39, %16 : vector<16x128xf32>
    %41 = arith.truncf %40 : vector<16x128xf32> to vector<16x128xbf16>
    %c12_i32 = arith.constant 12 : i32
    %42 = vector.broadcast %c12_i32 : i32 to vector<16x128xi32>
    %43 = arith.shrsi %17, %42 : vector<16x128xi32>
    %c15_i32_9 = arith.constant 15 : i32
    %44 = vector.broadcast %c15_i32_9 : i32 to vector<16x128xi32>
    %45 = arith.andi %43, %44 : vector<16x128xi32>
    %46 = arith.sitofp %45 : vector<16x128xi32> to vector<16x128xf32>
    %47 = arith.mulf %46, %11 : vector<16x128xf32>
    %48 = arith.addf %47, %16 : vector<16x128xf32>
    %49 = arith.truncf %48 : vector<16x128xf32> to vector<16x128xbf16>
    %c16_i32 = arith.constant 16 : i32
    %50 = vector.broadcast %c16_i32 : i32 to vector<16x128xi32>
    %51 = arith.shrsi %17, %50 : vector<16x128xi32>
    %c15_i32_10 = arith.constant 15 : i32
    %52 = vector.broadcast %c15_i32_10 : i32 to vector<16x128xi32>
    %53 = arith.andi %51, %52 : vector<16x128xi32>
    %54 = arith.sitofp %53 : vector<16x128xi32> to vector<16x128xf32>
    %55 = arith.mulf %54, %11 : vector<16x128xf32>
    %56 = arith.addf %55, %16 : vector<16x128xf32>
    %57 = arith.truncf %56 : vector<16x128xf32> to vector<16x128xbf16>
    %c20_i32 = arith.constant 20 : i32
    %58 = vector.broadcast %c20_i32 : i32 to vector<16x128xi32>
    %59 = arith.shrsi %17, %58 : vector<16x128xi32>
    %c15_i32_11 = arith.constant 15 : i32
    %60 = vector.broadcast %c15_i32_11 : i32 to vector<16x128xi32>
    %61 = arith.andi %59, %60 : vector<16x128xi32>
    %62 = arith.sitofp %61 : vector<16x128xi32> to vector<16x128xf32>
    %63 = arith.mulf %62, %11 : vector<16x128xf32>
    %64 = arith.addf %63, %16 : vector<16x128xf32>
    %65 = arith.truncf %64 : vector<16x128xf32> to vector<16x128xbf16>
    %c24_i32 = arith.constant 24 : i32
    %66 = vector.broadcast %c24_i32 : i32 to vector<16x128xi32>
    %67 = arith.shrsi %17, %66 : vector<16x128xi32>
    %c15_i32_12 = arith.constant 15 : i32
    %68 = vector.broadcast %c15_i32_12 : i32 to vector<16x128xi32>
    %69 = arith.andi %67, %68 : vector<16x128xi32>
    %70 = arith.sitofp %69 : vector<16x128xi32> to vector<16x128xf32>
    %71 = arith.mulf %70, %11 : vector<16x128xf32>
    %72 = arith.addf %71, %16 : vector<16x128xf32>
    %73 = arith.truncf %72 : vector<16x128xf32> to vector<16x128xbf16>
    %c28_i32 = arith.constant 28 : i32
    %74 = vector.broadcast %c28_i32 : i32 to vector<16x128xi32>
    %75 = arith.shrsi %17, %74 : vector<16x128xi32>
    %c15_i32_13 = arith.constant 15 : i32
    %76 = vector.broadcast %c15_i32_13 : i32 to vector<16x128xi32>
    %77 = arith.andi %75, %76 : vector<16x128xi32>
    %78 = arith.sitofp %77 : vector<16x128xi32> to vector<16x128xf32>
    %79 = arith.mulf %78, %11 : vector<16x128xf32>
    %80 = arith.addf %79, %16 : vector<16x128xf32>
    %81 = arith.truncf %80 : vector<16x128xf32> to vector<16x128xbf16>
    %c1_i32 = arith.constant 1 : i32
    %82 = arith.addi %3, %c1_i32 : i32
    %83 = arith.index_cast %82 : i32 to index
    %c0_14 = arith.constant 0 : index
    %84 = vector.load %arg5[%83, %c0_14] : memref<2x128xf32, #tpu.memory_space<vmem>>, vector<1x128xf32>
    %c1_i32_15 = arith.constant 1 : i32
    %85 = arith.addi %3, %c1_i32_15 : i32
    %86 = arith.index_cast %85 : i32 to index
    %c0_16 = arith.constant 0 : index
    %87 = vector.load %arg6[%86, %c0_16] : memref<2x128xf32, #tpu.memory_space<vmem>>, vector<1x128xf32>
    %88 = vector.shape_cast %84 : vector<1x128xf32> to vector<1x128xf32>
    %89 = vector.broadcast %88 : vector<1x128xf32> to vector<16x128xf32>
    %cst_17 = arith.constant 8.000000e+00 : f32
    %90 = vector.broadcast %cst_17 : f32 to vector<1x128xf32>
    %91 = arith.mulf %90, %84 : vector<1x128xf32>
    %92 = arith.subf %87, %91 : vector<1x128xf32>
    %93 = vector.shape_cast %92 : vector<1x128xf32> to vector<1x128xf32>
    %94 = vector.broadcast %93 : vector<1x128xf32> to vector<16x128xf32>
    %c16 = arith.constant 16 : index
    %c0_18 = arith.constant 0 : index
    %95 = vector.load %arg4[%c16, %c0_18] : memref<32x128xi32, #tpu.memory_space<vmem>>, vector<16x128xi32>
    %c0_i32_19 = arith.constant 0 : i32
    %96 = vector.broadcast %c0_i32_19 : i32 to vector<16x128xi32>
    %97 = arith.shrsi %95, %96 : vector<16x128xi32>
    %c15_i32_20 = arith.constant 15 : i32
    %98 = vector.broadcast %c15_i32_20 : i32 to vector<16x128xi32>
    %99 = arith.andi %97, %98 : vector<16x128xi32>
    %100 = arith.sitofp %99 : vector<16x128xi32> to vector<16x128xf32>
    %101 = arith.mulf %100, %89 : vector<16x128xf32>
    %102 = arith.addf %101, %94 : vector<16x128xf32>
    %103 = arith.truncf %102 : vector<16x128xf32> to vector<16x128xbf16>
    %c4_i32_21 = arith.constant 4 : i32
    %104 = vector.broadcast %c4_i32_21 : i32 to vector<16x128xi32>
    %105 = arith.shrsi %95, %104 : vector<16x128xi32>
    %c15_i32_22 = arith.constant 15 : i32
    %106 = vector.broadcast %c15_i32_22 : i32 to vector<16x128xi32>
    %107 = arith.andi %105, %106 : vector<16x128xi32>
    %108 = arith.sitofp %107 : vector<16x128xi32> to vector<16x128xf32>
    %109 = arith.mulf %108, %89 : vector<16x128xf32>
    %110 = arith.addf %109, %94 : vector<16x128xf32>
    %111 = arith.truncf %110 : vector<16x128xf32> to vector<16x128xbf16>
    %c8_i32_23 = arith.constant 8 : i32
    %112 = vector.broadcast %c8_i32_23 : i32 to vector<16x128xi32>
    %113 = arith.shrsi %95, %112 : vector<16x128xi32>
    %c15_i32_24 = arith.constant 15 : i32
    %114 = vector.broadcast %c15_i32_24 : i32 to vector<16x128xi32>
    %115 = arith.andi %113, %114 : vector<16x128xi32>
    %116 = arith.sitofp %115 : vector<16x128xi32> to vector<16x128xf32>
    %117 = arith.mulf %116, %89 : vector<16x128xf32>
    %118 = arith.addf %117, %94 : vector<16x128xf32>
    %119 = arith.truncf %118 : vector<16x128xf32> to vector<16x128xbf16>
    %c12_i32_25 = arith.constant 12 : i32
    %120 = vector.broadcast %c12_i32_25 : i32 to vector<16x128xi32>
    %121 = arith.shrsi %95, %120 : vector<16x128xi32>
    %c15_i32_26 = arith.constant 15 : i32
    %122 = vector.broadcast %c15_i32_26 : i32 to vector<16x128xi32>
    %123 = arith.andi %121, %122 : vector<16x128xi32>
    %124 = arith.sitofp %123 : vector<16x128xi32> to vector<16x128xf32>
    %125 = arith.mulf %124, %89 : vector<16x128xf32>
    %126 = arith.addf %125, %94 : vector<16x128xf32>
    %127 = arith.truncf %126 : vector<16x128xf32> to vector<16x128xbf16>
    %c16_i32_27 = arith.constant 16 : i32
    %128 = vector.broadcast %c16_i32_27 : i32 to vector<16x128xi32>
    %129 = arith.shrsi %95, %128 : vector<16x128xi32>
    %c15_i32_28 = arith.constant 15 : i32
    %130 = vector.broadcast %c15_i32_28 : i32 to vector<16x128xi32>
    %131 = arith.andi %129, %130 : vector<16x128xi32>
    %132 = arith.sitofp %131 : vector<16x128xi32> to vector<16x128xf32>
    %133 = arith.mulf %132, %89 : vector<16x128xf32>
    %134 = arith.addf %133, %94 : vector<16x128xf32>
    %135 = arith.truncf %134 : vector<16x128xf32> to vector<16x128xbf16>
    %c20_i32_29 = arith.constant 20 : i32
    %136 = vector.broadcast %c20_i32_29 : i32 to vector<16x128xi32>
    %137 = arith.shrsi %95, %136 : vector<16x128xi32>
    %c15_i32_30 = arith.constant 15 : i32
    %138 = vector.broadcast %c15_i32_30 : i32 to vector<16x128xi32>
    %139 = arith.andi %137, %138 : vector<16x128xi32>
    %140 = arith.sitofp %139 : vector<16x128xi32> to vector<16x128xf32>
    %141 = arith.mulf %140, %89 : vector<16x128xf32>
    %142 = arith.addf %141, %94 : vector<16x128xf32>
    %143 = arith.truncf %142 : vector<16x128xf32> to vector<16x128xbf16>
    %c24_i32_31 = arith.constant 24 : i32
    %144 = vector.broadcast %c24_i32_31 : i32 to vector<16x128xi32>
    %145 = arith.shrsi %95, %144 : vector<16x128xi32>
    %c15_i32_32 = arith.constant 15 : i32
    %146 = vector.broadcast %c15_i32_32 : i32 to vector<16x128xi32>
    %147 = arith.andi %145, %146 : vector<16x128xi32>
    %148 = arith.sitofp %147 : vector<16x128xi32> to vector<16x128xf32>
    %149 = arith.mulf %148, %89 : vector<16x128xf32>
    %150 = arith.addf %149, %94 : vector<16x128xf32>
    %151 = arith.truncf %150 : vector<16x128xf32> to vector<16x128xbf16>
    %c28_i32_33 = arith.constant 28 : i32
    %152 = vector.broadcast %c28_i32_33 : i32 to vector<16x128xi32>
    %153 = arith.shrsi %95, %152 : vector<16x128xi32>
    %c15_i32_34 = arith.constant 15 : i32
    %154 = vector.broadcast %c15_i32_34 : i32 to vector<16x128xi32>
    %155 = arith.andi %153, %154 : vector<16x128xi32>
    %156 = arith.sitofp %155 : vector<16x128xi32> to vector<16x128xf32>
    %157 = arith.mulf %156, %89 : vector<16x128xf32>
    %158 = arith.addf %157, %94 : vector<16x128xf32>
    %159 = arith.truncf %158 : vector<16x128xf32> to vector<16x128xbf16>
    %160 = tpu.concatenate %25, %33, %41, %49, %57, %65, %73, %81, %103, %111, %119, %127, %135, %143, %151, %159 in 0 : vector<16x128xbf16>, vector<16x128xbf16>, vector<16x128xbf16>, vector<16x128xbf16>, vector<16x128xbf16>, vector<16x128xbf16>, vector<16x128xbf16>, vector<16x128xbf16>, vector<16x128xbf16>, vector<16x128xbf16>, vector<16x128xbf16>, vector<16x128xbf16>, vector<16x128xbf16>, vector<16x128xbf16>, vector<16x128xbf16>, vector<16x128xbf16> -> vector<256x128xbf16>
    %c0_35 = arith.constant 0 : index
    %c0_36 = arith.constant 0 : index
    %161 = vector.load %arg8[%c0_35, %c0_36] : memref<16x128xf32, #tpu.memory_space<vmem>>, vector<16x128xf32>
    %c0_37 = arith.constant 0 : index
    %c0_38 = arith.constant 0 : index
    %162 = vector.load %arg3[%c0_37, %c0_38] : memref<16x256xbf16, #tpu.memory_space<vmem>>, vector<16x256xbf16>
    %cst_39 = arith.constant dense<0.000000e+00> : vector<16x128xf32>
    %163 = tpu.matmul %162, %160, %cst_39 {dimension_numbers = #tpu.dot_dimension_numbers<[1], [0], [0], [1], [0, 0, 1, 1], [], []>} : vector<16x256xbf16>, vector<256x128xbf16>, vector<16x128xf32> -> vector<16x128xf32>
    %164 = arith.addf %161, %163 : vector<16x128xf32>
    %c0_40 = arith.constant 0 : index
    %c0_41 = arith.constant 0 : index
    %165 = vector.load %arg8[%c0_40, %c0_41] : memref<16x128xf32, #tpu.memory_space<vmem>>, vector<16x128xf32>
    tpu.vector_store %arg8[%c0_40, %c0_41], %164 {strides = array<i32>} : memref<16x128xf32, #tpu.memory_space<vmem>>, vector<16x128xf32>,
    %c0_i32_42 = arith.constant 0 : i32
    %166 = arith.cmpi eq, %arg2, %c0_i32_42 : i32
    %167 = arith.extui %166 : i1 to i32
    %c0_i32_43 = arith.constant 0 : i32
    %168 = arith.cmpi ne, %167, %c0_i32_43 : i32
    scf.if %168 {
      %c0_44 = arith.constant 0 : index
      %c0_45 = arith.constant 0 : index
      %169 = vector.load %arg8[%c0_44, %c0_45] : memref<16x128xf32, #tpu.memory_space<vmem>>, vector<16x128xf32>
      %170 = arith.truncf %169 : vector<16x128xf32> to vector<16x128xbf16>
      %c0_46 = arith.constant 0 : index
      %c0_47 = arith.constant 0 : index
      %171 = vector.load %arg7[%c0_46, %c0_47] : memref<16x128xbf16, #tpu.memory_space<vmem>>, vector<16x128xbf16>
      tpu.vector_store %arg7[%c0_46, %c0_47], %170 {strides = array<i32>} : memref<16x128xbf16, #tpu.memory_space<vmem>>, vector<16x128xbf16>,
    } else {
    }
    return
  }
  func.func @transform_0(%arg0: i32, %arg1: i32, %arg2: i32) -> (i32, i32) {
    %c0_i32 = arith.constant 0 : i32
    return %arg0, %arg2 : i32, i32
  }
  func.func @transform_1(%arg0: i32, %arg1: i32, %arg2: i32) -> (i32, i32) {
    %c0_i32 = arith.constant 0 : i32
    return %arg2, %arg1 : i32, i32
  }
  func.func @transform_2(%arg0: i32, %arg1: i32, %arg2: i32) -> (i32, i32) {
    %c0_i32 = arith.constant 0 : i32
    %c0_i32_0 = arith.constant 0 : i32
    return %c0_i32, %arg1 : i32, i32
  }
  func.func @transform_3(%arg0: i32, %arg1: i32, %arg2: i32) -> (i32, i32) {
    %c0_i32 = arith.constant 0 : i32
    %c0_i32_0 = arith.constant 0 : i32
    return %c0_i32, %arg1 : i32, i32
  }
  func.func @transform_4(%arg0: i32, %arg1: i32, %arg2: i32) -> (i32, i32) {
    %c0_i32 = arith.constant 0 : i32
    return %arg0, %arg1 : i32, i32
  }
}

</mosaic_0001>

<bundles_post_ra>
// kernel: tpu_custom_call.1
= control target key start
LH: loop header
LB: loop body
LE: loop exit
PB: predicated region body
PF: predicated region fallthrough
CT: control target
= control target key end

     0   :  { %9 = vsyncpa [#allocation4], 0  ;;  %s633_s0 = inlined_call_operand.hbm [shape: bf16[16,256], index: 0, kind: input, shape index: {}]   ;;  %s634_s1 = inlined_call_operand.hbm [shape: s32[32,128], index: 1, kind: input, shape index: {}]   ;;  %s635_s2 = inlined_call_operand.vmem [shape: f32[2,128], index: 2, kind: input, shape index: {}]   ;;  %s636_s3 = inlined_call_operand.vmem [shape: f32[2,128], index: 3, kind: input, shape index: {}]   ;;  %s637_s4 = inlined_call_operand.hbm [shape: bf16[16,128], index: 4, kind: output, shape index: {}]  }
   0x1   :  { %10 = vsyncpa [#allocation7], 0 }
   0x2   :  { %11 = vsyncpa [#allocation5], 0  ;;  %s468_s15 = smov [#allocation3]  }
   0x3   :  { %s17_s16 = sshll.u32 %s468_s15, 4  ;;  %s18_s16 = int_to_ptr.vmem [resolvable:$true] %s17_s16 }
   0x4   :  { %s410_s17 = scalar_lea.vmem %s18_s16, 256  ;;  %p415_p1 = scmp.lt.s32.totalorder %s18_s16, %s18_s16 }
   0x5   :  { %p411_p0 = scmp.ne.s32.totalorder %s18_s16, %s410_s17  ;;  %p416_p2 = scmp.lt.s32.totalorder %s410_s17, %s410_s17 }
   0x7   :  { %p417_p3 = por %p416_p2, %p415_p1 }
   0x9   :  { %p418_p4 = pnand %p417_p3, %p411_p0 }
   0xb   :  { %421 = shalt.err (!%p418_p4)
}
   0xc   :  { %s469_s18 = smov 128   ;;  %s470_s19 = smov 8  }
   0xd   :  { %23 = dma.hbm_to_vmem [thread:$0]  %s633_s0, 256, %s18_s16, [#allocation4], %s469_s18, %s469_s18, %s470_s19  }
   0xe   :  { %s471_s22 = smov [#allocation6]  }
   0xf   :  { %s29_s23 = sshll.u32 %s471_s22, 4  ;;  %s30_s23 = int_to_ptr.vmem [resolvable:$true] %s29_s23 }
  0x10   :  { %s430_s24 = scalar_lea.vmem %s30_s23, 512  ;;  %p435_p6 = scmp.lt.s32.totalorder %s30_s23, %s30_s23 }
  0x11   :  { %p431_p5 = scmp.ne.s32.totalorder %s30_s23, %s430_s24  ;;  %p436_p7 = scmp.lt.s32.totalorder %s430_s24, %s430_s24 }
  0x13   :  { %p437_p8 = por %p436_p7, %p435_p6 }
  0x15   :  { %p438_p9 = pnand %p437_p8, %p431_p5 }
  0x17   :  { %441 = shalt.err (!%p438_p9)
}
  0x18   :  { %35 = dma.hbm_to_vmem [thread:$0]  %s634_s1, 512, %s30_s23, [#allocation7], %s469_s18, %s469_s18, %s470_s19  }
  0x19   :  { %462 = dma.done.wait [#allocation4], 256  }
  0x1a   :  { %463 = vsyncadd [#allocation4], 4294967040 }
  0x1b   :  { %464 = dma.done.wait [#allocation7], 512  }
  0x1c   :  { %465 = vsyncadd [#allocation7], 4294966784  ;;  %v58_v0 = vlaneseq  ;;  %v355_v3 = vld [vmem:[%s635_s2 + $0x1] sm:$0x1]  ;;  %v516_v8 = vld [vmem:[#allocation6 + $0x18] sm:$0xff] }
  0x1d   :  { %v356_v4 = vld [vmem:[%s636_s3 + $0x1] sm:$0x1]  ;;  %v165_v7 = vmul.f32 8.0, %v355_v3  ;;  %v55_v10 = vld [vmem:[%s635_s2] sm:$0x1]  ;;  %v522_v11 = vld [vmem:[#allocation6] sm:$0xff] }
  0x1e   :  { %v59_v1 = vshrl.u32 %v58_v0, 7  ;;  %v512_v5 = vld [vmem:[#allocation6 + $0x10] sm:$0xff]  ;;  %v358_v12 = vshrl.u32 %v516_v8, 28  ;;  %v62_v15 = vmul.f32 8.0, %v55_v10  ;;  %v530_v16 = vld [vmem:[#allocation6 + $0x8] sm:$0xff]  ;;  %v353_v17 = vshrl.u32 %v522_v11, 28 }
  0x1f   :  { %v357_v9 = vshrl.u32 %v512_v5, 28  ;;  %v57_v13 = vld [vmem:[%s636_s3] sm:$0x1]  ;;  %v166_v18 = vsub.f32 %v356_v4, %v165_v7  ;;  %v354_v20 = vshrl.u32 %v530_v16, 28  ;;  %v237_v21 = vshra.s32 %v512_v5, 24  ;;  %s472_s2 = smov [#allocation8]  }
  0x20   :  { %v60_v2 = vsub.s32 0, %v59_v1  ;;  %v253_v22 = vcvt.s32.f32 %v358_v12  ;;  %v63_v23 = vsub.f32 %v57_v13, %v62_v15  ;;  %v149_v24 = vcvt.s32.f32 %v353_v17  ;;  %v401_v26 = vld [vmem:[#allocation3 + $0x4] ss:$8 sps:$4 sm:$0xff]   ;;  %s338_s3 = sshll.u32 %s472_s2, 4  ;;  %s339_s3 = int_to_ptr.vmem [resolvable:$true] %s338_s3 }
  0x21   :  { %v252_v19 = vcvt.s32.f32 %v357_v9  ;;  %v238_v25 = vshra.s32 %v516_v8, 24  ;;  %v150_v29 = vcvt.s32.f32 %v354_v20  ;;  %v239_v30 = vand.u32 15, %v237_v21  ;;  %305 = vmatprep.mubr.bf16.mxu0 %v401_v26  ;;  %s442_s7 = scalar_lea.vmem %s339_s3, 128  ;;  %p447_p11 = scmp.lt.s32.totalorder %s339_s3, %s339_s3 }
  0x22   :  { %v514_v6 = vrot.slane %v355_v3, %v60_v2  ;;  %v528_v14 = vrot.slane %v55_v10, %v60_v2  ;;  %v536_v27 = vrot.slane %v166_v18, %v60_v2  ;;  %v540_v32 = vrot.slane %v63_v23, %v60_v2  ;;  %p443_p10 = scmp.ne.s32.totalorder %s339_s3, %s442_s7  ;;  %p448_p12 = scmp.lt.s32.totalorder %s442_s7, %s442_s7 }
  0x23   :  { %v240_v34 = vand.u32 15, %v238_v25  ;;  %v241_v37 = vcvt.s32.f32 %v239_v30  ;;  %v134_v38 = vshra.s32 %v522_v11, 24  ;;  %v135_v42 = vshra.s32 %v530_v16, 24 }
  0x24   :  { %v254_v28 = vmul.f32 %v252_v19, %v514_v6  ;;  %v255_v31 = vmul.f32 %v253_v22, %v514_v6  ;;  %v151_v33 = vmul.f32 %v149_v24, %v528_v14  ;;  %v152_v36 = vmul.f32 %v150_v29, %v528_v14  ;;  %p449_p13 = por %p448_p12, %p447_p11 }
  0x25   :  { %v242_v41 = vcvt.s32.f32 %v240_v34  ;;  %v243_v44 = vmul.f32 %v241_v37, %v514_v6  ;;  %v136_v45 = vand.u32 15, %v134_v38  ;;  %v226_v46 = vshra.s32 %v512_v5, 20 }
  0x26   :  { %v256_v35 = vadd.f32 %v254_v28, %v536_v27  ;;  %v257_v39 = vadd.f32 %v255_v31, %v536_v27  ;;  %v153_v40 = vadd.f32 %v151_v33, %v540_v32  ;;  %v154_v43 = vadd.f32 %v152_v36, %v540_v32  ;;  %p450_p0 = pnand %p449_p13, %p443_p10 }
  0x27   :  { %v244_v48 = vmul.f32 %v242_v41, %v514_v6  ;;  %v137_v49 = vand.u32 15, %v135_v42  ;;  %v227_v50 = vshra.s32 %v516_v8, 20  ;;  %v245_v52 = vadd.f32 %v243_v44, %v536_v27 }
  0x28   :  { %v258_v47 = vpack.c.bf16 %v257_v39, %v256_v35  ;;  %v155_v51 = vpack.c.bf16 %v154_v43, %v153_v40  ;;  %v138_v53 = vcvt.s32.f32 %v136_v45  ;;  %v228_v54 = vand.u32 15, %v226_v46 }
  0x29   :  { %v246_v55 = vadd.f32 %v244_v48, %v536_v27  ;;  %v139_v56 = vcvt.s32.f32 %v137_v49  ;;  %v229_v57 = vand.u32 15, %v227_v50  ;;  %v123_v58 = vshra.s32 %v522_v11, 20 }
  0x2a   :  { %370 = vmatprep.subr.bf16.mxu0 %v258_v47  ;;  %v140_v59 = vmul.f32 %v138_v53, %v528_v14  ;;  %v230_v60 = vcvt.s32.f32 %v228_v54  ;;  %v124_v61 = vshra.s32 %v530_v16, 20  ;;  %v215_v62 = vshra.s32 %v512_v5, 16 }
  0x2b   :  { %371 = vmatpush3.bf16.msra.mxu0 %v155_v51  ;;  %v247_v63 = vpack.c.bf16 %v246_v55, %v245_v52  ;;  %v141_v0 = vmul.f32 %v139_v56, %v528_v14  ;;  %v231_v1 = vcvt.s32.f32 %v229_v57  ;;  %v125_v2 = vand.u32 15, %v123_v58 }
  0x2c   :  { %v142_v3 = vadd.f32 %v140_v59, %v540_v32  ;;  %v232_v4 = vmul.f32 %v230_v60, %v514_v6  ;;  %v126_v7 = vand.u32 15, %v124_v61  ;;  %v216_v9 = vshra.s32 %v516_v8, 16 }
  0x2d   :  { %372 = vmatprep.subr.bf16.mxu0 %v247_v63  ;;  %v143_v10 = vadd.f32 %v141_v0, %v540_v32  ;;  %v233_v12 = vmul.f32 %v231_v1, %v514_v6  ;;  %v127_v13 = vcvt.s32.f32 %v125_v2  ;;  %v217_v15 = vand.u32 15, %v215_v62 }
  0x2e   :  { %v234_v17 = vadd.f32 %v232_v4, %v536_v27  ;;  %v128_v18 = vcvt.s32.f32 %v126_v7  ;;  %v218_v19 = vand.u32 15, %v216_v9  ;;  %v112_v20 = vshra.s32 %v522_v11, 16 }
  0x2f   :  { %v144_v21 = vpack.c.bf16 %v143_v10, %v142_v3  ;;  %v235_v22 = vadd.f32 %v233_v12, %v536_v27  ;;  %v129_v23 = vmul.f32 %v127_v13, %v528_v14  ;;  %v219_v24 = vcvt.s32.f32 %v217_v15 }
  0x30   :  { %v130_v25 = vmul.f32 %v128_v18, %v528_v14  ;;  %v220_v26 = vcvt.s32.f32 %v218_v19  ;;  %v113_v28 = vshra.s32 %v530_v16, 16  ;;  %v114_v29 = vand.u32 15, %v112_v20 }
  0x31   :  { %373 = vmatpush3.bf16.msra.mxu0 %v144_v21  ;;  %v236_v30 = vpack.c.bf16 %v235_v22, %v234_v17  ;;  %v131_v31 = vadd.f32 %v129_v23, %v540_v32  ;;  %v221_v33 = vmul.f32 %v219_v24, %v514_v6  ;;  %v204_v34 = vshra.s32 %v512_v5, 12 }
  0x32   :  { %v132_v35 = vadd.f32 %v130_v25, %v540_v32  ;;  %v222_v36 = vmul.f32 %v220_v26, %v514_v6  ;;  %v115_v37 = vand.u32 15, %v113_v28  ;;  %v116_v38 = vcvt.s32.f32 %v114_v29 }
  0x33   :  { %374 = vmatprep.subr.bf16.mxu0 %v236_v30  ;;  %v223_v39 = vadd.f32 %v221_v33, %v536_v27  ;;  %v205_v40 = vshra.s32 %v516_v8, 12  ;;  %v206_v41 = vand.u32 15, %v204_v34  ;;  %v101_v42 = vshra.s32 %v522_v11, 12 }
  0x34   :  { %v133_v43 = vpack.c.bf16 %v132_v35, %v131_v31  ;;  %v224_v44 = vadd.f32 %v222_v36, %v536_v27  ;;  %v117_v45 = vcvt.s32.f32 %v115_v37  ;;  %v118_v46 = vmul.f32 %v116_v38, %v528_v14 }
  0x35   :  { %v207_v47 = vand.u32 15, %v205_v40  ;;  %v208_v48 = vcvt.s32.f32 %v206_v41  ;;  %v102_v49 = vshra.s32 %v530_v16, 12  ;;  %v103_v50 = vand.u32 15, %v101_v42 }
  0x36   :  { %375 = vmatpush3.bf16.msra.mxu0 %v133_v43  ;;  %v225_v51 = vpack.c.bf16 %v224_v44, %v223_v39  ;;  %v119_v52 = vmul.f32 %v117_v45, %v528_v14  ;;  %v120_v53 = vadd.f32 %v118_v46, %v540_v32  ;;  %v193_v54 = vshra.s32 %v512_v5, 8 }
  0x37   :  { %v209_v55 = vcvt.s32.f32 %v207_v47  ;;  %v210_v56 = vmul.f32 %v208_v48, %v514_v6  ;;  %v104_v57 = vand.u32 15, %v102_v49  ;;  %v105_v58 = vcvt.s32.f32 %v103_v50 }
  0x38   :  { %376 = vmatprep.subr.bf16.mxu0 %v225_v51  ;;  %v121_v59 = vadd.f32 %v119_v52, %v540_v32  ;;  %v194_v60 = vshra.s32 %v516_v8, 8  ;;  %v195_v61 = vand.u32 15, %v193_v54  ;;  %v90_v62 = vshra.s32 %v522_v11, 8 }
  0x39   :  { %v211_v63 = vmul.f32 %v209_v55, %v514_v6  ;;  %v212_v0 = vadd.f32 %v210_v56, %v536_v27  ;;  %v106_v1 = vcvt.s32.f32 %v104_v57  ;;  %v107_v2 = vmul.f32 %v105_v58, %v528_v14 }
  0x3a   :  { %v122_v3 = vpack.c.bf16 %v121_v59, %v120_v53  ;;  %v196_v4 = vand.u32 15, %v194_v60  ;;  %v197_v7 = vcvt.s32.f32 %v195_v61  ;;  %v91_v9 = vshra.s32 %v530_v16, 8 }
  0x3b   :  { %v213_v10 = vadd.f32 %v211_v63, %v536_v27  ;;  %v108_v12 = vmul.f32 %v106_v1, %v528_v14  ;;  %v109_v13 = vadd.f32 %v107_v2, %v540_v32  ;;  %v92_v15 = vand.u32 15, %v90_v62 }
  0x3c   :  { %377 = vmatpush3.bf16.msra.mxu0 %v122_v3  ;;  %v198_v17 = vcvt.s32.f32 %v196_v4  ;;  %v199_v18 = vmul.f32 %v197_v7, %v514_v6  ;;  %v93_v19 = vand.u32 15, %v91_v9  ;;  %v182_v20 = vshra.s32 %v512_v5, 4 }
  0x3d   :  { %v214_v21 = vpack.c.bf16 %v213_v10, %v212_v0  ;;  %v110_v22 = vadd.f32 %v108_v12, %v540_v32  ;;  %v94_v23 = vcvt.s32.f32 %v92_v15  ;;  %v183_v24 = vshra.s32 %v516_v8, 4  ;;  %v399_v10 = vld [vmem:[#allocation3] ss:$8 sps:$4 sm:$0xff]  }
  0x3e   :  { %v200_v25 = vmul.f32 %v198_v17, %v514_v6  ;;  %v201_v26 = vadd.f32 %v199_v18, %v536_v27  ;;  %v95_v28 = vcvt.s32.f32 %v93_v19  ;;  %v184_v29 = vand.u32 15, %v182_v20 }
  0x3f   :  { %378 = vmatprep.subr.bf16.mxu0 %v214_v21  ;;  %v111_v30 = vpack.c.bf16 %v110_v22, %v109_v13  ;;  %v96_v31 = vmul.f32 %v94_v23, %v528_v14  ;;  %v185_v33 = vand.u32 15, %v183_v24  ;;  %v79_v34 = vshra.s32 %v522_v11, 4 }
  0x40   :  { %v202_v35 = vadd.f32 %v200_v25, %v536_v27  ;;  %v97_v36 = vmul.f32 %v95_v28, %v528_v14  ;;  %v186_v37 = vcvt.s32.f32 %v184_v29  ;;  %v80_v38 = vshra.s32 %v530_v16, 4 }
  0x41   :  { %379 = vmatpush3.bf16.msra.mxu0 %v111_v30  ;;  %v98_v39 = vadd.f32 %v96_v31, %v540_v32  ;;  %v187_v40 = vcvt.s32.f32 %v185_v33  ;;  %v81_v41 = vand.u32 15, %v79_v34  ;;  %v173_v42 = vand.u32 15, %v512_v5 }
  0x42   :  { %v203_v43 = vpack.c.bf16 %v202_v35, %v201_v26  ;;  %v99_v44 = vadd.f32 %v97_v36, %v540_v32  ;;  %v188_v45 = vmul.f32 %v186_v37, %v514_v6  ;;  %v82_v46 = vand.u32 15, %v80_v38 }
  0x43   :  { %v189_v47 = vmul.f32 %v187_v40, %v514_v6  ;;  %v83_v48 = vcvt.s32.f32 %v81_v41  ;;  %v174_v49 = vand.u32 15, %v516_v8  ;;  %v175_v50 = vcvt.s32.f32 %v173_v42 }
  0x44   :  { %380 = vmatprep.subr.bf16.mxu0 %v203_v43  ;;  %v100_v51 = vpack.c.bf16 %v99_v44, %v98_v39  ;;  %v190_v52 = vadd.f32 %v188_v45, %v536_v27  ;;  %v84_v53 = vcvt.s32.f32 %v82_v46  ;;  %v70_v54 = vand.u32 15, %v522_v11 }
  0x45   :  { %v191_v5 = vadd.f32 %v189_v47, %v536_v27  ;;  %v85_v55 = vmul.f32 %v83_v48, %v528_v14  ;;  %v176_v56 = vcvt.s32.f32 %v174_v49  ;;  %v177_v57 = vmul.f32 %v175_v50, %v514_v6 }
  0x46   :  { %381 = vmatpush3.bf16.msra.mxu0 %v100_v51  ;;  %v86_v58 = vmul.f32 %v84_v53, %v528_v14  ;;  %v71_v8 = vand.u32 15, %v530_v16  ;;  %v72_v59 = vcvt.s32.f32 %v70_v54 }
  0x47   :  { %v192_v60 = vpack.c.bf16 %v191_v5, %v190_v52  ;;  %v87_v61 = vadd.f32 %v85_v55, %v540_v32  ;;  %v178_v62 = vmul.f32 %v176_v56, %v514_v6  ;;  %v179_v11 = vadd.f32 %v177_v57, %v536_v27 }
  0x48   :  { %v88_v63 = vadd.f32 %v86_v58, %v540_v32  ;;  %v73_v0 = vcvt.s32.f32 %v71_v8  ;;  %v74_v1 = vmul.f32 %v72_v59, %v528_v14 }
  0x49   :  { %382 = vmatprep.subr.bf16.mxu0 %v192_v60  ;;  %v180_v2 = vadd.f32 %v178_v62, %v536_v27 }
  0x4a   :  { %v89_v3 = vpack.c.bf16 %v88_v63, %v87_v61  ;;  %v75_v4 = vmul.f32 %v73_v0, %v528_v14  ;;  %v76_v16 = vadd.f32 %v74_v1, %v540_v32 }
  0x4b   :  { %v181_v7 = vpack.c.bf16 %v180_v2, %v179_v11 }
  0x4c   :  { %383 = vmatpush3.bf16.msra.mxu0 %v89_v3  ;;  %v77_v9 = vadd.f32 %v75_v4, %v540_v32 }
  0x4d   :  { %384 = vmatprep.subr.bf16.mxu0 %v181_v7 }
  0x4e   :  { %v78_v6 = vpack.c.bf16 %v77_v9, %v76_v16 }
  0x50   :  { %385 = vmatpush3.bf16.msra.mxu0 %v78_v6 }
  0x53   :  { %306 = vmatmul.mubr.bf16.vlgmr.msra.gmra.mxu0 %v399_v10 }
 0x113   :  { %v386_v12 = vpop.f32.mrf.mxu0 }
 0x115   :  { %v387_v13 = vpop.f32.mrf.mxu0 }
 0x116   :  { %v388_v17 = vadd.f32 %v387_v13, %v386_v12 }
 0x117   :  { %v389_v15 = vpop.f32.mrf.mxu0 }
 0x119   :  { %v390_v27 = vpop.f32.mrf.mxu0 }
 0x11a   :  { %v391_v18 = vadd.f32 %v390_v27, %v389_v15 }
 0x11c   :  { %v368_v14 = vpack.c.bf16 %v391_v18, %v388_v17 }
 0x11e   :  { %369 = vst [vmem:[#allocation8] sm:$0xff] %v368_v14  }
 0x11f   :  { %453 = shalt.err (!%p450_p0)
}
 0x120   :  { %s473_s8 = smov 64   ;;  %s474_s9 = smov 4  }
 0x121   :  { %344 = dma.vmem_to_hbm [thread:$0]  %s339_s3, 128, %s637_s4, [#allocation5], %s473_s8, %s473_s8, %s474_s9  }
 0x122   :  { %466 = dma.done.wait [#allocation5], 128  }
 0x123   :  { %467 = vsyncadd [#allocation5], 4294967168 }
 0x124   :  { %348 = vsyncpa [#allocation4], 1 }
 0x125   :  { %349 = vsyncpa [#allocation7], 1 }
 0x126   :  { %350 = vsyncpa [#allocation5], 1 }

</bundles_post_ra>
